<compile_context>
chip_gen: v7x
topology: tpu7x:2x2x1
jax: 0.10.0
libtpu: 0.0.40
codegen_flags: <defaults>
</compile_context>

<pallas_src>
import jax
import jax.numpy as jnp
from jax.experimental import pallas as pl
from jax.experimental.pallas import tpu as pltpu

EPS = 1e-5
VMEM_CAP = 48 * 2 ** 20     # leave headroom vs v7x's 64 MiB per-TC VMEM


def _largest_divisor(n, cap, step):
    """Largest multiple of `step` that divides n and is <= cap (fallback: n)."""
    best = None
    d = step
    while d <= min(n, cap):
        if n % d == 0:
            best = d
        d += step
    return best if best is not None else n


def conv_stats_kernel(x_ref, w_ref, y_ref, st_ref):
    """One batch image: 3x3 conv as 3 accumulating lane-Toeplitz MXU dots plus
    per-image BatchNorm partial row sums.

    x_ref:  (H+2, (W+2)*Cin)        bf16  padded image, lane-fused (x, ci)
    w_ref:  (3, (W+2)*Cin, W*Cout)  bf16  banded weights, one band per ky tap
    y_ref:  (H, W*Cout)             bf16  conv output, lane-dense (x, co)
    st_ref: (2, W*Cout)             f32   [per-lane sum ; per-lane sum-of-squares]
    """
    h = y_ref.shape[0]
    # ky shifts are pure sublane-offset row slices of a lane-dense slab; each
    # dot is (H, (W+2)*Cin) @ ((W+2)*Cin, W*Cout) with f32 accumulation.
    acc = jnp.dot(x_ref[pl.ds(0, h), :], w_ref[0],
                  preferred_element_type=jnp.float32)
    for ky in (1, 2):                      # static unroll: 3 accumulating dots
        acc = acc + jnp.dot(x_ref[pl.ds(ky, h), :], w_ref[ky],
                            preferred_element_type=jnp.float32)
    y_ref[...] = acc.astype(y_ref.dtype)   # lane-dense bf16 store (full-lane vst)

    # BN partials from the f32 accumulator: per-lane column sums only; the
    # (W, Cout) lane-group fold + cross-image reduce is tiny jnp glue outside,
    # so every grid axis stays "parallel".
    st_ref[pl.ds(0, 1), :] = jnp.sum(acc, axis=0, keepdims=True)
    st_ref[pl.ds(1, 1), :] = jnp.sum(acc * acc, axis=0, keepdims=True)


def bn_relu_kernel(y_ref, scale_ref, shift_ref, o_ref):
    """Lane-dense fused BN affine + ReLU; elementwise math in f32 (v5e-safe)."""
    y = y_ref[...].astype(jnp.float32)
    o_ref[...] = jnp.maximum(y * scale_ref[...] + shift_ref[...], 0.0)


@jax.jit
def single_conv_forward(x_nchw, w_oihw, bias, gamma, beta):
    """Forward matching torch single_conv(ch_in, ch_out)(x) in training mode.

    x_nchw: (N, Cin, H, W) f32; w_oihw: (Cout, Cin, 3, 3); bias/gamma/beta: (Cout,)
    returns (N, Cout, H, W) f32.
    """
    # Conv bias accepted for API fidelity but unused: a per-channel constant
    # added before training-mode BatchNorm is exactly cancelled by the mean
    # subtraction, so dropping it is a no-op on the forward output.
    del bias

    N, Cin, H, W = x_nchw.shape
    Cout = w_oihw.shape[0]
    wc = W * Cout                 # lane-dense output width (=128 here)
    kin = (W + 2) * Cin           # lane-fused padded input width

    # ---- glue: NCHW -> lane-fused padded channels-last view (one pad copy) ----
    x_nhwc = jnp.transpose(x_nchw, (0, 2, 3, 1))
    x_pad = jnp.pad(x_nhwc, ((0, 0), (1, 1), (1, 1), (0, 0)))
    x_lane = x_pad.reshape(N, H + 2, kin).astype(jnp.bfloat16)   # free reshape

    # Banded "lane-Toeplitz" weights: W_ky[(x+kx)*Cin+ci, x*Cout+co] = w[co,ci,ky,kx]
    # so conv row y is  sum_ky  x_lane[y+ky, :] @ W_ky  (no im2col, no relayout).
    w_t = jnp.transpose(w_oihw, (2, 3, 1, 0)).astype(jnp.float32)   # (3,3,Cin,Cout)
    bands = []
    for ky in range(3):
        m = jnp.zeros((kin, wc), jnp.float32)
        for kx in range(3):
            shift = jnp.eye(W + 2, W, k=-kx, dtype=jnp.float32)      # (W+2, W)
            m = m + jnp.kron(shift, w_t[ky, kx])
        bands.append(m)
    w_band = jnp.stack(bands, axis=0).astype(jnp.bfloat16)          # (3, kin, wc)

    # ---------------- pass 1: conv + partial BN stats (grid over N) ----------------
    blk1 = ((H + 2) * kin * 2 + 3 * kin * wc * 2 + H * wc * 2 + 2 * wc * 4)
    vmem1 = int(min(VMEM_CAP, max(4 * 2 ** 20, 6 * blk1)))
    cost1 = pl.CostEstimate(
        flops=2 * N * H * 3 * kin * wc,
        transcendentals=0,
        bytes_accessed=(x_lane.size * 2 + w_band.size * 2
                        + N * H * wc * 2 + N * 2 * wc * 4))

    y_imgs, stats = pl.pallas_call(
        conv_stats_kernel,
        out_shape=(
            jax.ShapeDtypeStruct((N, H, wc), jnp.bfloat16),
            jax.ShapeDtypeStruct((N, 2, wc), jnp.float32),
        ),
        grid_spec=pltpu.PrefetchScalarGridSpec(
            num_scalar_prefetch=0,
            grid=(N,),
            in_specs=[
                pl.BlockSpec((None, H + 2, kin), lambda n: (n, 0, 0)),
                pl.BlockSpec((3, kin, wc), lambda n: (0, 0, 0)),
            ],
            out_specs=(
                pl.BlockSpec((None, H, wc), lambda n: (n, 0, 0)),
                pl.BlockSpec((None, 2, wc), lambda n: (n, 0, 0)),
            ),
        ),
        compiler_params=pltpu.CompilerParams(
            dimension_semantics=("parallel",),
            vmem_limit_bytes=vmem1),
        cost_estimate=cost1,
    )(x_lane, w_band)

    # -------- tiny jnp glue: finalize BN stats, fold gamma/beta --------
    cnt = float(N * H * W)
    st = jnp.sum(stats, axis=0)                      # (2, W*Cout)
    st = st.reshape(2, W, Cout).sum(axis=1)          # (2, Cout)
    mean = st[0] / cnt
    var = jnp.maximum(st[1] / cnt - mean * mean, 0.0)   # biased var (PyTorch BN)
    # TODO(synk): streaming E[x^2]-E[x]^2 in f32 can cancel for very large
    # N*H*W / large means; use centered per-tile sums if shapes grow.
    inv = jax.lax.rsqrt(var + EPS)
    scale_c = gamma * inv                            # (Cout,)
    shift_c = beta - mean * scale_c                  # (Cout,)

    # ---------------- pass 2: lane-dense BN affine + ReLU ----------------
    rows = N * H
    y2 = y_imgs.reshape(rows, wc)                    # contiguous (free) re-view
    scale_row = jnp.tile(scale_c, W).reshape(1, wc)  # lane = x*Cout + co
    shift_row = jnp.tile(shift_c, W).reshape(1, wc)

    tr = _largest_divisor(rows, cap=4096, step=8)
    blk2 = tr * wc * 2 + tr * wc * 4 + 2 * wc * 4
    vmem2 = int(min(VMEM_CAP, max(4 * 2 ** 20, 6 * blk2)))
    cost2 = pl.CostEstimate(flops=2 * rows * wc, transcendentals=0,
                            bytes_accessed=rows * wc * 2 + rows * wc * 4 + 2 * wc * 4)

    out2 = pl.pallas_call(
        bn_relu_kernel,
        out_shape=jax.ShapeDtypeStruct((rows, wc), jnp.float32),
        grid_spec=pltpu.PrefetchScalarGridSpec(
            num_scalar_prefetch=0,
            grid=(rows // tr,),
            in_specs=[
                pl.BlockSpec((tr, wc), lambda i: (i, 0)),
                pl.BlockSpec((1, wc), lambda i: (0, 0)),
                pl.BlockSpec((1, wc), lambda i: (0, 0)),
            ],
            out_specs=pl.BlockSpec((tr, wc), lambda i: (i, 0)),
        ),
        compiler_params=pltpu.CompilerParams(
            dimension_semantics=("parallel",),
            vmem_limit_bytes=vmem2),
        cost_estimate=cost2,
    )(y2, scale_row, shift_row)

    # back to the PyTorch NCHW interface
    out_nhwc = out2.reshape(N, H, W, Cout)
    return jnp.transpose(out_nhwc, (0, 3, 1, 2))


def reference_forward(x_nchw, w_oihw, bias, gamma, beta):
    """Plain-JAX reference (conv + bias + training-mode BN + ReLU)."""
    y = jax.lax.conv_general_dilated(
        x_nchw, w_oihw, window_strides=(1, 1), padding=((1, 1), (1, 1)),
        dimension_numbers=("NCHW", "OIHW", "NCHW"))
    y = y + bias[None, :, None, None]
    mean = y.mean(axis=(0, 2, 3), keepdims=True)
    var = ((y - mean) ** 2).mean(axis=(0, 2, 3), keepdims=True)
    y = (y - mean) * jax.lax.rsqrt(var + EPS)
    y = y * gamma[None, :, None, None] + beta[None, :, None, None]
    return jnp.maximum(y, 0.0)


if __name__ == "__main__":
    # Small shapes consistent with the module: ch_in=4, ch_out=8, 16x16 spatial.
    N, Cin, Cout, H, W = 2, 4, 8, 16, 16

    key = jax.random.PRNGKey(0)
    k_x, k_w, k_b = jax.random.split(key, 3)

    x = jax.random.normal(k_x, (N, Cin, H, W), dtype=jnp.float32)
    fan_in = Cin * 3 * 3
    bound = 1.0 / (fan_in ** 0.5)
    w = jax.random.uniform(k_w, (Cout, Cin, 3, 3), jnp.float32, -bound, bound)
    b = jax.random.uniform(k_b, (Cout,), jnp.float32, -bound, bound)
    gamma = jnp.ones((Cout,), jnp.float32)   # fresh BatchNorm2d affine init
    beta = jnp.zeros((Cout,), jnp.float32)
    # TODO(synk): BatchNorm running_mean/running_var buffer updates (training-
    # mode side effect) are not modeled; only the forward output is produced.

    out = jax.block_until_ready(single_conv_forward(x, w, b, gamma, beta))
    assert out.shape == (N, Cout, H, W)

    # Apples-to-apples check: same bf16-quantized conv operands as the kernel's
    # MXU inputs (f32 accumulation in both; kernel additionally stores the conv
    # intermediate in bf16, hence the slightly loosened tolerance).
    ref_bf = reference_forward(
        x.astype(jnp.bfloat16).astype(jnp.float32),
        w.astype(jnp.bfloat16).astype(jnp.float32), b, gamma, beta)
    assert jnp.allclose(out, ref_bf, atol=2e-2, rtol=2e-2), \
        "mismatch vs bf16-operand reference"

    # Fidelity vs the full-f32 PyTorch-style reference (looser: bf16 MXU inputs).
    ref_f32 = reference_forward(x, w, b, gamma, beta)
    assert jnp.allclose(out, ref_f32, atol=5e-2, rtol=5e-2), \
        "mismatch vs f32 reference"

    print("KERNEL_OK")
</pallas_src>

<mosaic_0001>
module attributes {stable_mosaic.version = 11 : i64} {
  func.func @conv_stats_kernel(%arg0: i32, %arg1: memref<1x18x72xbf16, #tpu.memory_space<vmem>>, %arg2: memref<3x72x128xbf16, #tpu.memory_space<vmem>>, %arg3: memref<1x16x128xbf16, #tpu.memory_space<vmem>>, %arg4: memref<1x2x128xf32, #tpu.memory_space<vmem>>) attributes {dimension_semantics = [#tpu.dimension_semantics<parallel>], iteration_bounds = array<i64: 2>, scalar_prefetch = 0 : i64, scratch_operands = 0 : i64, tpu.core_type = #tpu.core_type<tc>, window_params = [{transform_indices = @transform_0, window_bounds = array<i64: 1, 18, 72>}, {pipeline_mode = #tpu.pipeline_mode<synchronous>, transform_indices = @transform_1, window_bounds = array<i64: 3, 72, 128>}, {transform_indices = @transform_2, window_bounds = array<i64: 1, 16, 128>}, {transform_indices = @transform_3, window_bounds = array<i64: 1, 2, 128>}]} {
    %c0 = arith.constant 0 : index
    %c0_0 = arith.constant 0 : index
    %c0_1 = arith.constant 0 : index
    %0 = vector.load %arg1[%c0, %c0_0, %c0_1] : memref<1x18x72xbf16, #tpu.memory_space<vmem>>, vector<1x16x72xbf16>
    %1 = vector.shape_cast %0 : vector<1x16x72xbf16> to vector<16x72xbf16>
    %c0_2 = arith.constant 0 : index
    %c0_3 = arith.constant 0 : index
    %c0_4 = arith.constant 0 : index
    %2 = vector.load %arg2[%c0_2, %c0_3, %c0_4] : memref<3x72x128xbf16, #tpu.memory_space<vmem>>, vector<1x72x128xbf16>
    %3 = vector.shape_cast %2 : vector<1x72x128xbf16> to vector<72x128xbf16>
    %cst = arith.constant dense<0.000000e+00> : vector<16x128xf32>
    %4 = tpu.matmul %1, %3, %cst {dimension_numbers = #tpu.dot_dimension_numbers<[1], [0], [0], [1], [0, 0, 1, 1], [], []>} : vector<16x72xbf16>, vector<72x128xbf16>, vector<16x128xf32> -> vector<16x128xf32>
    %c0_5 = arith.constant 0 : index
    %c1 = arith.constant 1 : index
    %c0_6 = arith.constant 0 : index
    %5 = vector.load %arg1[%c0_5, %c1, %c0_6] : memref<1x18x72xbf16, #tpu.memory_space<vmem>>, vector<1x16x72xbf16>
    %6 = vector.shape_cast %5 : vector<1x16x72xbf16> to vector<16x72xbf16>
    %c1_7 = arith.constant 1 : index
    %c0_8 = arith.constant 0 : index
    %c0_9 = arith.constant 0 : index
    %7 = vector.load %arg2[%c1_7, %c0_8, %c0_9] : memref<3x72x128xbf16, #tpu.memory_space<vmem>>, vector<1x72x128xbf16>
    %8 = vector.shape_cast %7 : vector<1x72x128xbf16> to vector<72x128xbf16>
    %cst_10 = arith.constant dense<0.000000e+00> : vector<16x128xf32>
    %9 = tpu.matmul %6, %8, %cst_10 {dimension_numbers = #tpu.dot_dimension_numbers<[1], [0], [0], [1], [0, 0, 1, 1], [], []>} : vector<16x72xbf16>, vector<72x128xbf16>, vector<16x128xf32> -> vector<16x128xf32>
    %10 = arith.addf %4, %9 : vector<16x128xf32>
    %c0_11 = arith.constant 0 : index
    %c2 = arith.constant 2 : index
    %c0_12 = arith.constant 0 : index
    %11 = vector.load %arg1[%c0_11, %c2, %c0_12] : memref<1x18x72xbf16, #tpu.memory_space<vmem>>, vector<1x16x72xbf16>
    %12 = vector.shape_cast %11 : vector<1x16x72xbf16> to vector<16x72xbf16>
    %c2_13 = arith.constant 2 : index
    %c0_14 = arith.constant 0 : index
    %c0_15 = arith.constant 0 : index
    %13 = vector.load %arg2[%c2_13, %c0_14, %c0_15] : memref<3x72x128xbf16, #tpu.memory_space<vmem>>, vector<1x72x128xbf16>
    %14 = vector.shape_cast %13 : vector<1x72x128xbf16> to vector<72x128xbf16>
    %cst_16 = arith.constant dense<0.000000e+00> : vector<16x128xf32>
    %15 = tpu.matmul %12, %14, %cst_16 {dimension_numbers = #tpu.dot_dimension_numbers<[1], [0], [0], [1], [0, 0, 1, 1], [], []>} : vector<16x72xbf16>, vector<72x128xbf16>, vector<16x128xf32> -> vector<16x128xf32>
    %16 = arith.addf %10, %15 : vector<16x128xf32>
    %17 = arith.truncf %16 : vector<16x128xf32> to vector<16x128xbf16>
    %c0_17 = arith.constant 0 : index
    %c0_18 = arith.constant 0 : index
    %c0_19 = arith.constant 0 : index
    %18 = vector.load %arg3[%c0_17, %c0_18, %c0_19] : memref<1x16x128xbf16, #tpu.memory_space<vmem>>, vector<1x16x128xbf16>
    %19 = vector.shape_cast %18 : vector<1x16x128xbf16> to vector<16x128xbf16>
    %20 = vector.shape_cast %17 : vector<16x128xbf16> to vector<1x16x128xbf16>
    tpu.vector_store %arg3[%c0_17, %c0_18, %c0_19], %20 {strides = array<i32>} : memref<1x16x128xbf16, #tpu.memory_space<vmem>>, vector<1x16x128xbf16>,
    %cst_20 = arith.constant dense<0.000000e+00> : vector<128xf32>
    %21 = vector.multi_reduction <add>, %16, %cst_20 [0] : vector<16x128xf32> to vector<128xf32>
    %22 = vector.shape_cast %21 : vector<128xf32> to vector<1x128xf32>
    %c0_21 = arith.constant 0 : index
    %c0_22 = arith.constant 0 : index
    %c0_23 = arith.constant 0 : index
    %23 = vector.load %arg4[%c0_21, %c0_22, %c0_23] : memref<1x2x128xf32, #tpu.memory_space<vmem>>, vector<1x1x128xf32>
    %24 = vector.shape_cast %23 : vector<1x1x128xf32> to vector<1x128xf32>
    %25 = vector.shape_cast %22 : vector<1x128xf32> to vector<1x1x128xf32>
    tpu.vector_store %arg4[%c0_21, %c0_22, %c0_23], %25 {strides = array<i32>} : memref<1x2x128xf32, #tpu.memory_space<vmem>>, vector<1x1x128xf32>,
    %26 = arith.mulf %16, %16 : vector<16x128xf32>
    %cst_24 = arith.constant dense<0.000000e+00> : vector<128xf32>
    %27 = vector.multi_reduction <add>, %26, %cst_24 [0] : vector<16x128xf32> to vector<128xf32>
    %28 = vector.shape_cast %27 : vector<128xf32> to vector<1x128xf32>
    %c0_25 = arith.constant 0 : index
    %c1_26 = arith.constant 1 : index
    %c0_27 = arith.constant 0 : index
    %29 = vector.load %arg4[%c0_25, %c1_26, %c0_27] : memref<1x2x128xf32, #tpu.memory_space<vmem>>, vector<1x1x128xf32>
    %30 = vector.shape_cast %29 : vector<1x1x128xf32> to vector<1x128xf32>
    %31 = vector.shape_cast %28 : vector<1x128xf32> to vector<1x1x128xf32>
    tpu.vector_store %arg4[%c0_25, %c1_26, %c0_27], %31 {strides = array<i32>} : memref<1x2x128xf32, #tpu.memory_space<vmem>>, vector<1x1x128xf32>,
    return
  }
  func.func @transform_0(%arg0: i32) -> (i32, i32, i32) {
    %c0_i32 = arith.constant 0 : i32
    %c0_i32_0 = arith.constant 0 : i32
    %c0_i32_1 = arith.constant 0 : i32
    return %arg0, %c0_i32, %c0_i32_0 : i32, i32, i32
  }
  func.func @transform_1(%arg0: i32) -> (i32, i32, i32) {
    %c0_i32 = arith.constant 0 : i32
    %c0_i32_0 = arith.constant 0 : i32
    %c0_i32_1 = arith.constant 0 : i32
    %c0_i32_2 = arith.constant 0 : i32
    return %c0_i32, %c0_i32_0, %c0_i32_1 : i32, i32, i32
  }
  func.func @transform_2(%arg0: i32) -> (i32, i32, i32) {
    %c0_i32 = arith.constant 0 : i32
    %c0_i32_0 = arith.constant 0 : i32
    %c0_i32_1 = arith.constant 0 : i32
    return %arg0, %c0_i32, %c0_i32_0 : i32, i32, i32
  }
  func.func @transform_3(%arg0: i32) -> (i32, i32, i32) {
    %c0_i32 = arith.constant 0 : i32
    %c0_i32_0 = arith.constant 0 : i32
    %c0_i32_1 = arith.constant 0 : i32
    return %arg0, %c0_i32, %c0_i32_0 : i32, i32, i32
  }
}

module attributes {stable_mosaic.version = 11 : i64} {
  func.func @bn_relu_kernel(%arg0: i32, %arg1: memref<32x128xbf16, #tpu.memory_space<vmem>>, %arg2: memref<1x128xf32, #tpu.memory_space<vmem>>, %arg3: memref<1x128xf32, #tpu.memory_space<vmem>>, %arg4: memref<32x128xf32, #tpu.memory_space<vmem>>) attributes {dimension_semantics = [#tpu.dimension_semantics<parallel>], iteration_bounds = array<i64: 1>, scalar_prefetch = 0 : i64, scratch_operands = 0 : i64, tpu.core_type = #tpu.core_type<tc>, window_params = [{transform_indices = @transform_0, window_bounds = array<i64: 32, 128>}, {pipeline_mode = #tpu.pipeline_mode<synchronous>, transform_indices = @transform_1, window_bounds = array<i64: 1, 128>}, {pipeline_mode = #tpu.pipeline_mode<synchronous>, transform_indices = @transform_2, window_bounds = array<i64: 1, 128>}, {transform_indices = @transform_3, window_bounds = array<i64: 32, 128>}]} {
    %c0 = arith.constant 0 : index
    %c0_0 = arith.constant 0 : index
    %0 = vector.load %arg1[%c0, %c0_0] : memref<32x128xbf16, #tpu.memory_space<vmem>>, vector<32x128xbf16>
    %1 = arith.extf %0 : vector<32x128xbf16> to vector<32x128xf32>
    %c0_1 = arith.constant 0 : index
    %c0_2 = arith.constant 0 : index
    %2 = vector.load %arg2[%c0_1, %c0_2] : memref<1x128xf32, #tpu.memory_space<vmem>>, vector<1x128xf32>
    %3 = vector.broadcast %2 : vector<1x128xf32> to vector<32x128xf32>
    %4 = arith.mulf %1, %3 : vector<32x128xf32>
    %c0_3 = arith.constant 0 : index
    %c0_4 = arith.constant 0 : index
    %5 = vector.load %arg3[%c0_3, %c0_4] : memref<1x128xf32, #tpu.memory_space<vmem>>, vector<1x128xf32>
    %6 = vector.broadcast %5 : vector<1x128xf32> to vector<32x128xf32>
    %7 = arith.addf %4, %6 : vector<32x128xf32>
    %cst = arith.constant 0.000000e+00 : f32
    %8 = vector.broadcast %cst : f32 to vector<32x128xf32>
    %9 = arith.maximumf %7, %8 : vector<32x128xf32>
    %c0_5 = arith.constant 0 : index
    %c0_6 = arith.constant 0 : index
    %10 = vector.load %arg4[%c0_5, %c0_6] : memref<32x128xf32, #tpu.memory_space<vmem>>, vector<32x128xf32>
    tpu.vector_store %arg4[%c0_5, %c0_6], %9 {strides = array<i32>} : memref<32x128xf32, #tpu.memory_space<vmem>>, vector<32x128xf32>,
    return
  }
  func.func @transform_0(%arg0: i32) -> (i32, i32) {
    %c0_i32 = arith.constant 0 : i32
    %c0_i32_0 = arith.constant 0 : i32
    return %arg0, %c0_i32 : i32, i32
  }
  func.func @transform_1(%arg0: i32) -> (i32, i32) {
    %c0_i32 = arith.constant 0 : i32
    %c0_i32_0 = arith.constant 0 : i32
    %c0_i32_1 = arith.constant 0 : i32
    return %c0_i32, %c0_i32_0 : i32, i32
  }
  func.func @transform_2(%arg0: i32) -> (i32, i32) {
    %c0_i32 = arith.constant 0 : i32
    %c0_i32_0 = arith.constant 0 : i32
    %c0_i32_1 = arith.constant 0 : i32
    return %c0_i32, %c0_i32_0 : i32, i32
  }
  func.func @transform_3(%arg0: i32) -> (i32, i32) {
    %c0_i32 = arith.constant 0 : i32
    %c0_i32_0 = arith.constant 0 : i32
    return %arg0, %c0_i32 : i32, i32
  }
}

</mosaic_0001>

<bundles_post_ra>
// kernel: tile.13
= control target key start
LH: loop header
LB: loop body
LE: loop exit
PB: predicated region body
PF: predicated region fallthrough
CT: control target
= control target key end

     0   :  { %s28_s0 = inlined_call_operand.vmem [shape: f32[8], index: 0, kind: input, shape index: {}]   ;;  %s29_s1 = inlined_call_operand.vmem [shape: f32[16,8], index: 1, kind: output, shape index: {}]  }
   0x1   :  { %v4_v0 = vld [vmem:[%s28_s0] ss:$0 sm:$0xff] }
   0x2   :  { %5 = vst [vmem:[%s29_s1] sm:$0xff] %v4_v0  ;;  %8 = vst [vmem:[%s29_s1 + $0x8] sm:$0xff] %v4_v0 }

// kernel: tile.14
= control target key start
LH: loop header
LB: loop body
LE: loop exit
PB: predicated region body
PF: predicated region fallthrough
CT: control target
= control target key end

     0   :  { %s131_s10 = smov 120   ;;  %s132_s11 = smov 104   ;;  %vm3_vm0 = vcmask 64512   ;;  %vm9_vm1 = vcmask 1048512   ;;  %vm15_vm2 = vcmask 982912   ;;  %vm21_vm3 = vcmask 917312   ;;  %s207_s0 = inlined_call_operand.vmem [shape: f32[16,8], index: 0, kind: input, shape index: {}]   ;;  %s208_s1 = inlined_call_operand.vmem [shape: f32[1,128], index: 1, kind: output, shape index: {}]  }
   0x1   :  { %v101_v0 = vld [vmem:[%s207_s0 + $0xf] sm:$0x1]   ;;  %v103_v1 = vld [vmem:[%s207_s0 + $0xd] sm:$0x1]   ;;  %v102_v2 = vld [vmem:[%s207_s0 + $0xe] sm:$0x1]  }
   0x2   :  { %7 = vrot.lane.b32.xlu0 %v101_v0, %s131_s10  ;;  %19 = vrot.lane.b32.xlu1 %v103_v1, %s132_s11  ;;  %v104_v3 = vld [vmem:[%s207_s0 + $0xc] sm:$0x1]   ;;  %s133_s16 = smov 112   ;;  %s134_s17 = smov 96   ;;  %v105_v4 = vld [vmem:[%s207_s0 + $0xb] sm:$0x1]  }
   0x3   :  { %v106_v5 = vld [vmem:[%s207_s0 + $0xa] sm:$0x1]   ;;  %v2_v6 = vld [vmem:[%s207_s0] sm:$0x1]   ;;  %s135_s24 = smov 88   ;;  %s136_s25 = smov 80  }
   0x4   :  { %4 = vst.msk [vmem:[#allocation0] sm:$0x1] %vm3_vm0, %v2_v6   ;;  %v107_v7 = vld [vmem:[%s207_s0 + $0x9] sm:$0x1]   ;;  %v108_v8 = vld [vmem:[%s207_s0 + $0x8] sm:$0x1]  }
   0x5   :  { %s137_s30 = smov 72   ;;  %s138_s2 = smov 64   ;;  %v109_v9 = vld [vmem:[%s207_s0 + $0x7] sm:$0x1]   ;;  %v110_v10 = vld [vmem:[%s207_s0 + $0x6] sm:$0x1]  }
   0x6   :  { %13 = vrot.lane.b32.xlu0 %v102_v2, %s133_s16  ;;  %25 = vrot.lane.b32.xlu1 %v104_v3, %s134_s17  ;;  %s139_s7 = smov 56   ;;  %s140_s8 = smov 48   ;;  %v111_v11 = vld [vmem:[%s207_s0 + $0x5] sm:$0x1]   ;;  %v112_v12 = vld [vmem:[%s207_s0 + $0x4] sm:$0x1]  }
   0x7   :  { %s141_s13 = smov 40   ;;  %s142_s14 = smov 32   ;;  %v113_v13 = vld [vmem:[%s207_s0 + $0x3] sm:$0x1]   ;;  %v114_v14 = vld [vmem:[%s207_s0 + $0x2] sm:$0x1]  }
   0x8   :  { %s143_s19 = smov 24   ;;  %s144_s20 = smov 16   ;;  %v115_v15 = vld [vmem:[%s207_s0 + $0x1] sm:$0x1]   ;;  %vm27_vm4 = vcmask 851712   ;;  %vm33_vm5 = vcmask 786112  }
   0x9   :  { %s145_s0 = smov 8   ;;  %vm39_vm6 = vcmask 720512   ;;  %vm45_vm7 = vcmask 654912   ;;  %vm51_vm8 = vcmask 589312   ;;  %vm57_vm9 = vcmask 523712  }
   0xa   :  { %31 = vrot.lane.b32.xlu0 %v105_v4, %s135_s24  ;;  %37 = vrot.lane.b32.xlu1 %v106_v5, %s136_s25  ;;  %vm63_vm10 = vcmask 458112   ;;  %vm69_vm11 = vcmask 392512   ;;  %vm75_vm12 = vcmask 326912   ;;  %vm81_vm13 = vcmask 261312  }
   0xb   :  { %vm87_vm14 = vcmask 195712   ;;  %vm93_vm15 = vcmask 130112  }
   0xe   :  { %43 = vrot.lane.b32.xlu0 %v107_v7, %s137_s30  ;;  %49 = vrot.lane.b32.xlu1 %v108_v8, %s138_s2 }
  0x12   :  { %55 = vrot.lane.b32.xlu0 %v109_v9, %s139_s7  ;;  %61 = vrot.lane.b32.xlu1 %v110_v10, %s140_s8 }
  0x16   :  { %67 = vrot.lane.b32.xlu0 %v111_v11, %s141_s13  ;;  %73 = vrot.lane.b32.xlu1 %v112_v12, %s142_s14 }
  0x1a   :  { %79 = vrot.lane.b32.xlu0 %v113_v13, %s143_s19  ;;  %85 = vrot.lane.b32.xlu1 %v114_v14, %s144_s20 }
  0x1e   :  { %91 = vrot.lane.b32.xlu0 %v115_v15, %s145_s0 }
  0x74   :  { %v8_v16 = vpop.permute.xlu0 %7   ;;  %v20_v17 = vpop.permute.xlu1 %19  }
  0x75   :  { %10 = vst.msk [vmem:[#allocation0] sm:$0x1] %vm9_vm1, %v8_v16  }
  0x78   :  { %v14_v18 = vpop.permute.xlu0 %13   ;;  %v26_v19 = vpop.permute.xlu1 %25  }
  0x79   :  { %16 = vst.msk [vmem:[#allocation0] sm:$0x1] %vm15_vm2, %v14_v18  }
  0x7a   :  { %22 = vst.msk [vmem:[#allocation0] sm:$0x1] %vm21_vm3, %v20_v17  }
  0x7b   :  { %28 = vst.msk [vmem:[#allocation0] sm:$0x1] %vm27_vm4, %v26_v19  }
  0x7c   :  { %v32_v20 = vpop.permute.xlu0 %31   ;;  %v38_v21 = vpop.permute.xlu1 %37  }
  0x7d   :  { %34 = vst.msk [vmem:[#allocation0] sm:$0x1] %vm33_vm5, %v32_v20  }
  0x7e   :  { %40 = vst.msk [vmem:[#allocation0] sm:$0x1] %vm39_vm6, %v38_v21  }
  0x80   :  { %v44_v22 = vpop.permute.xlu0 %43   ;;  %v50_v23 = vpop.permute.xlu1 %49  }
  0x81   :  { %46 = vst.msk [vmem:[#allocation0] sm:$0x1] %vm45_vm7, %v44_v22  }
  0x82   :  { %52 = vst.msk [vmem:[#allocation0] sm:$0x1] %vm51_vm8, %v50_v23  }
  0x84   :  { %v56_v24 = vpop.permute.xlu0 %55   ;;  %v62_v25 = vpop.permute.xlu1 %61  }
  0x85   :  { %58 = vst.msk [vmem:[#allocation0] sm:$0x1] %vm57_vm9, %v56_v24  }
  0x86   :  { %64 = vst.msk [vmem:[#allocation0] sm:$0x1] %vm63_vm10, %v62_v25  }
  0x88   :  { %v68_v26 = vpop.permute.xlu0 %67   ;;  %v74_v27 = vpop.permute.xlu1 %73  }
  0x89   :  { %70 = vst.msk [vmem:[#allocation0] sm:$0x1] %vm69_vm11, %v68_v26  }
  0x8a   :  { %76 = vst.msk [vmem:[#allocation0] sm:$0x1] %vm75_vm12, %v74_v27  }
  0x8c   :  { %v80_v28 = vpop.permute.xlu0 %79   ;;  %v86_v29 = vpop.permute.xlu1 %85  }
  0x8d   :  { %82 = vst.msk [vmem:[#allocation0] sm:$0x1] %vm81_vm13, %v80_v28  }
  0x8e   :  { %88 = vst.msk [vmem:[#allocation0] sm:$0x1] %vm87_vm14, %v86_v29  }
  0x90   :  { %v92_v30 = vpop.permute.xlu0 %91  }
  0x91   :  { %94 = vst.msk [vmem:[#allocation0] sm:$0x1] %vm93_vm15, %v92_v30  }
  0x98   :  { %v98_v31 = vld [vmem:[#allocation0] sm:$0x1] }
  0x99   :  { %100 = vst [vmem:[%s208_s1] sm:$0x1] %v98_v31 }

// kernel: single_conv_forward.3
= control target key start
LH: loop header
LB: loop body
LE: loop exit
PB: predicated region body
PF: predicated region fallthrough
CT: control target
= control target key end

     0   :  { %s111_s0 = inlined_call_operand.vmem [shape: bf16[32,128], index: 0, kind: input, shape index: {}]   ;;  %s112_s1 = inlined_call_operand.vmem [shape: f32[1,128], index: 1, kind: input, shape index: {}]   ;;  %s113_s2 = inlined_call_operand.vmem [shape: f32[1,128], index: 2, kind: input, shape index: {}]   ;;  %s114_s3 = inlined_call_operand.vmem [shape: f32[32,128], index: 3, kind: output, shape index: {}]  }
   0x1   :  { %v59_v0 = vld [vmem:[%s111_s0] sm:$0xff]   ;;  %v66_v4 = vld [vmem:[%s111_s0 + $0x8] sm:$0xff]  }
   0x2   :  { %v56_v1 = vld [vmem:[%s112_s1] ss:$0 sm:$0xff]  ;;  %v60_v2 = vunpack.c.l.bf16 %v59_v0  ;;  %v61_v3 = vunpack.c.h.bf16 %v59_v0  ;;  %v64_v6 = vunpack.c.l.bf16 %v66_v4  ;;  %v65_v7 = vunpack.c.h.bf16 %v66_v4 }
   0x3   :  { %v57_v5 = vld [vmem:[%s113_s2] ss:$0 sm:$0xff] }
   0x4   :  { %v29_v8 = vmul.f32 %v60_v2, %v56_v1  ;;  %v30_v9 = vmul.f32 %v61_v3, %v56_v1  ;;  %v31_v10 = vmul.f32 %v64_v6, %v56_v1  ;;  %v32_v11 = vmul.f32 %v65_v7, %v56_v1 }
   0x6   :  { %v40_v12 = vadd.f32 %v57_v5, %v29_v8  ;;  %v41_v13 = vadd.f32 %v57_v5, %v30_v9  ;;  %v42_v14 = vadd.f32 %v57_v5, %v31_v10  ;;  %v43_v15 = vadd.f32 %v57_v5, %v32_v11 }
   0x8   :  { %v44_v16 = vmax.f32 %v40_v12, 0.0  ;;  %v45_v17 = vmax.f32 %v41_v13, 0.0  ;;  %v46_v18 = vmax.f32 %v42_v14, 0.0  ;;  %v47_v19 = vmax.f32 %v43_v15, 0.0 }
   0xa   :  { %48 = vst [vmem:[%s114_s3] sm:$0xff] %v44_v16  ;;  %49 = vst [vmem:[%s114_s3 + $0x8] sm:$0xff] %v45_v17 }
   0xb   :  { %50 = vst [vmem:[%s114_s3 + $0x10] sm:$0xff] %v46_v18  ;;  %51 = vst [vmem:[%s114_s3 + $0x18] sm:$0xff] %v47_v19 }

// kernel: single_conv_forward.2
= control target key start
LH: loop header
LB: loop body
LE: loop exit
PB: predicated region body
PF: predicated region fallthrough
CT: control target
= control target key end

     0   :  { %s768_s12 = smov 0   ;;  %s871_s0 = inlined_call_operand.vmem [shape: bf16[2,18,72], index: 0, kind: input, shape index: {}]   ;;  %s872_s1 = inlined_call_operand.vmem [shape: bf16[3,72,128], index: 1, kind: input, shape index: {}]   ;;  %s873_s2 = inlined_call_operand.vmem [shape: bf16[2,16,128], index: 2, kind: output, shape index: {0}]   ;;  %s874_s3 = inlined_call_operand.vmem [shape: f32[2,2,128], index: 3, kind: output, shape index: {1}]  }
   0x1 LB: > { %s583_s13 = sadd.s32 4294967295, %s744_s12   ;;  %p587_p0 = scmp.ge.s32.totalorder %s744_s12, 1  ;;  %s744_s12 = sphi %s768_s12, %s14_s12  }
   0x2   : > { %p140_p1 = scmp.lt.s32.totalorder %s744_s12, 3 }
   0x4   : > { %p141_p2 = pnand %p587_p0, %p140_p1 }
   0x5   : > { %v720_v0 = vld [vmem:[%s872_s1] sm:$0xff] (!%p141_p2)   ;;  %v746_v1 = vmov (!%p141_p2), 0.0   ;;  %v721_v2 = vld [vmem:[%s872_s1 + $0x8] sm:$0xff] (!%p141_p2)   ;;  %vm747_vm0 = vmmov (!%p141_p2), 0   ;;  %p168_p3 = scmp.lt.s32.totalorder (!%p141_p2), %s583_s13, 1  ;;  %v722_v4 = vld [vmem:[%s872_s1 + $0x10] sm:$0xff] (!%p141_p2)  }
   0x6   : > { %144 = sbr.rel (%p141_p2) target bundleno = 279 (0x117), region = 28  ;;  %675 = vmatprep.subr.bf16.mxu0 (!%p141_p2), %v746_v1  ;;  %661 = vmatprep.subr.bf16.mxu1 (!%p141_p2), %v746_v1  ;;  %v725_v3 = vld [vmem:[%s872_s1 + $0x24] sm:$0xff] (!%p141_p2)   ;;  %v729_v5 = vld [vmem:[%s872_s1 + $0x2c] sm:$0xff] (!%p141_p2)   ;;  %v723_v6 = vld [vmem:[%s872_s1 + $0x18] sm:$0xff] (!%p141_p2)   ;;  %vm257_vm1 = vcmask (!%p141_p2), 1043456   ;;  %vm253_vm2 = vcmask (!%p141_p2), 588800  }
   0x7   : > { %676 = vmatpush3.bf16.msra.mxu0 (!%p141_p2), %v720_v0  ;;  %685 = vmatprep.mubr.msk.bf16.mxu0 (!%p141_p2), %vm747_vm0, %v746_v1  ;;  %v724_v7 = vld [vmem:[%s872_s1 + $0x20] ss:$0 sps:$4 sm:$0xff] (!%p141_p2)   ;;  %v731_v10 = vld [vmem:[%s872_s1 + $0x34] sm:$0xff] (!%p141_p2)   ;;  %v735_v17 = vld [vmem:[%s872_s1 + $0x44] ss:$0 sps:$4 sm:$0xff] (!%p141_p2)   ;;  %vm389_vm4 = vcmask (!%p141_p2), 1046528  }
   0x8   : > { %677 = vmatprep.subr.bf16.mxu0 (!%p141_p2), %v746_v1  ;;  %671 = vmatprep.mubr.msk.bf16.mxu1 (!%p141_p2), %vm747_vm0, %v746_v1  ;;  %v332_v12 = vsel (!%p141_p2), %vm257_vm1, %v724_v7, 0  ;;  %v733_v13 = vld [vmem:[%s872_s1 + $0x3c] sm:$0xff] (!%p141_p2)   ;;  %v728_v20 = vld [vmem:[%s872_s1 + $0x48] sm:$0xff] (!%p141_p2)   ;;  %v259_v23 = vsel (!%p141_p2), %vm257_vm1, %v735_v17, 0  ;;  %vm213_vm3 = vsmask.f32 (!%p141_p2), 7424 }
   0x9   : > { %662 = vmatpush3.bf16.msra.mxu1 (!%p141_p2), %v725_v3  ;;  %v730_v24 = vld [vmem:[%s872_s1 + $0x50] sm:$0xff] (!%p141_p2)   ;;  %v732_v26 = vld [vmem:[%s872_s1 + $0x58] sm:$0xff] (!%p141_p2)   ;;  %v734_v29 = vld [vmem:[%s872_s1 + $0x60] sm:$0xff] (!%p141_p2)  }
   0xa   : > { %663 = vmatprep.subr.bf16.mxu1 (!%p141_p2), %v746_v1  ;;  %v737_v30 = vld [vmem:[%s872_s1 + $0x68] ss:$0 sps:$4 sm:$0xff] (!%p141_p2)  }
   0xb   : > { %678 = vmatpush3.bf16.msra.mxu0 (!%p141_p2), %v721_v2  ;;  %v424_v33 = vsel (!%p141_p2), %vm257_vm1, %v737_v30, 0 }
   0xc   : > { %679 = vmatprep.subr.bf16.mxu0 (!%p141_p2), %v746_v1 }
   0xd   : > { %s876_s13 = smov (!%p168_p3, %s583_s13), 1  ;;  %664 = vmatpush3.bf16.msra.mxu1 %v729_v5 }
   0xe   : > { %s709_s22 = smul.u32 12, %s876_s13  ;;  %665 = vmatprep.subr.bf16.mxu1 %v746_v1  ;;  %s635_s23 = sshll.u32 %s876_s13, 3 }
   0xf   : > { %680 = vmatpush3.bf16.msra.mxu0 %v722_v4  ;;  %s177_s26 = scalar_lea.vmem %s873_s2, %s635_s23  ;;  %s591_s27 = sshll.u32 %s876_s13, 1 }
  0x10   : > { %s809_s29 = scalar_lea.vmem %s871_s0, %s709_s22  ;;  %681 = vmatprep.subr.bf16.mxu0 %v746_v1  ;;  %s181_s30 = scalar_lea.vmem %s874_s3, %s591_s27 }
  0x11   : > { %v183_v8 = vld [vmem:[%s809_s29] sm:$0xf]  ;;  %v184_v9 = vld [vmem:[%s809_s29 + $0x4] sm:$0xf]  ;;  %666 = vmatpush3.bf16.msra.mxu1 %v731_v10 }
  0x12   : > { %v601_v11 = vcombine.low %v183_v8, %v184_v9  ;;  %v736_v14 = vld [vmem:[%s809_s29 + $0x8] ss:$0 sps:$4 sm:$0x11]   ;;  %667 = vmatprep.subr.bf16.mxu1 %v746_v1  ;;  %v375_v27 = vld [vmem:[%s809_s29] sm:$0xe] }
  0x13   : > { %682 = vmatpush3.bf16.msra.mxu0 %v723_v6  ;;  %v222_v19 = vshll.u32 %v736_v14, 16  ;;  %v624_v28 = vcombine.low %v375_v27, %v184_v9  ;;  %v391_v32 = vrot.slane %v736_v14, 1 }
  0x14   : > { %683 = vmatprep.subr.bf16.mxu0 %v746_v1  ;;  %v215_v15 = vshrl.u32 %v601_v11, 16  ;;  %v217_v16 = vshll.u32 %v601_v11, 16 }
  0x15   : > { %668 = vmatpush3.bf16.msra.mxu1 %v733_v13  ;;  %v224_v22 = vrot.slane %v222_v19, 1  ;;  %v390_v31 = vrot.slane %v624_v28, 1 }
  0x16   : > { %v219_v18 = vrot.slane %v217_v16, 1  ;;  %669 = vmatprep.subr.bf16.mxu1 %v746_v1 }
  0x17   : > { %684 = vmatpush3.bf16.msra.mxu0 %v332_v12  ;;  %v392_v34 = vsel %vm389_vm4, %v390_v31, %v391_v32 }
  0x18   : > { %689 = vmatprep.subr.bf16.mxu0 %v746_v1  ;;  %v220_v21 = vor.u32 %v219_v18, %v215_v15 }
  0x19   : > { %670 = vmatpush3.bf16.msra.mxu1 %v259_v23 }
  0x1a   : > { %686 = vmatmul.mubr.msk.bf16.vlgmr.msra.gmra.mrb[0].mxu0 %vm253_vm2, %v601_v11  ;;  %v225_v25 = vsel %vm213_vm3, %v220_v21, %v224_v22 }
  0x1b   : > { %690 = vmatpush3.bf16.msra.mxu0 %v728_v20  ;;  %699 = vmatprep.mubr.msk.bf16.mxu0 %vm747_vm0, %v746_v1 }
  0x1c   : > { %691 = vmatprep.subr.bf16.mxu0 %v746_v1  ;;  %672 = vmatmul.mubr.msk.bf16.vlgmr.msra.gmra.mrb[0].mxu1 %vm253_vm2, %v225_v25 }
  0x1f   : > { %692 = vmatpush3.bf16.msra.mxu0 %v730_v24 }
  0x20   : > { %693 = vmatprep.subr.bf16.mxu0 %v746_v1 }
  0x23   : > { %694 = vmatpush3.bf16.msra.mxu0 %v732_v26 }
  0x24   : > { %695 = vmatprep.subr.bf16.mxu0 %v746_v1 }
  0x27   : > { %696 = vmatpush3.bf16.msra.mxu0 %v734_v29 }
  0x28   : > { %697 = vmatprep.subr.bf16.mxu0 %v746_v1 }
  0x2b   : > { %698 = vmatpush3.bf16.msra.mxu0 %v424_v33 }
  0x2e   : > { %700 = vmatmul.mubr.msk.bf16.vlgmr.msra.gmra.mrb[0].mxu0 %vm253_vm2, %v392_v34 }
  0xef   : > { %v295_v35 = vpop.f32.mrb[0].mxu1 }
  0xf0   : > { %v673_v36 = vpop.f32.mrb[1].mxu1 }
  0xf1   : > { %v298_v37 = vpop.f32.mrb[2].mxu1 }
  0xf2   : > { %v674_v38 = vpop.f32.mrb[3].mxu1 }
 0x101   : > { %v460_v39 = vpop.f32.mrb[0].mxu0 }
 0x102   : > { %v703_v40 = vadd.f32 %v460_v39, %v295_v35  ;;  %v701_v41 = vpop.f32.mrb[1].mxu0 }
 0x103   : > { %v463_v42 = vpop.f32.mrb[2].mxu0 }
 0x104   : > { %v704_v43 = vadd.f32 %v463_v42, %v298_v37  ;;  %v702_v44 = vpop.f32.mrb[3].mxu0  ;;  %v487_v45 = vmul.f32 %v703_v40, %v703_v40 }
 0x106   : > { %v641_v46 = vpack.c.bf16 %v704_v43, %v703_v40  ;;  %v479_v47 = vadd.f32 %v704_v43, %v703_v40  ;;  %v488_v48 = vmul.f32 %v704_v43, %v704_v43 }
 0x108   : > { %642 = vst [vmem:[%s177_s26] sm:$0xff] %v641_v46   ;;  %v480_v49 = vrot.slane %v479_v47, 4  ;;  %v489_v50 = vadd.f32 %v488_v48, %v487_v45 }
 0x10a   : > { %v481_v51 = vadd.f32 %v480_v49, %v479_v47  ;;  %v490_v52 = vrot.slane %v489_v50, 4 }
 0x10c   : > { %v482_v53 = vrot.slane %v481_v51, 2  ;;  %v491_v54 = vadd.f32 %v490_v52, %v489_v50 }
 0x10e   : > { %v483_v55 = vadd.f32 %v482_v53, %v481_v51  ;;  %v492_v56 = vrot.slane %v491_v54, 2 }
 0x110   : > { %v484_v57 = vrot.slane %v483_v55, 1  ;;  %v493_v58 = vadd.f32 %v492_v56, %v491_v54 }
 0x112   : > { %v485_v59 = vadd.f32 %v484_v57, %v483_v55  ;;  %v494_v60 = vrot.slane %v493_v58, 1 }
 0x114   : > { %486 = vst [vmem:[%s181_s30] sm:$0x1] %v485_v59  ;;  %v495_v61 = vadd.f32 %v494_v60, %v493_v58 }
 0x116   : > { %496 = vst [vmem:[%s181_s30 + $0x1] sm:$0x1] %v495_v61 }
 0x117 PF: > { %s14_s12 = sadd.s32 1, %s744_s12  }
 0x118   : > { %p11_p4 = scmp.ge.s32.totalorder %s14_s12, 4  }
 0x11a   :  { %13 = sbr.rel (!%p11_p4) target bundleno = 1 (0x1), region = 72 }

</bundles_post_ra>
